<compile_context>
chip_gen: v7x
topology: tpu7x:2x2x1
jax: 0.10.0
libtpu: 0.0.40
codegen_flags: <defaults>
</compile_context>

<pallas_src>
import functools

import jax
import jax.numpy as jnp
from jax.experimental import pallas as pl
from jax.experimental.pallas import tpu as pltpu

_LANES = 128


def _dice_sums_kernel(x_ref, t_ref, out_ref, *,
                      num_classes, tile_rows, chunk_rows, lanes, n_chunks,
                      tiles_per_group, valid_rows, need_mask):
    C = num_classes
    g = pl.program_id(1)
    j = pl.program_id(2)

    @pl.when(j == 0)
    def _init():
        out_ref[...] = jnp.zeros_like(out_ref)

    # Global row offset of this tile (UNclamped: overhanging tiles are fully
    # masked even though their data was fetched from a clamped block index).
    row_base = (g * tiles_per_group + j) * tile_rows

    zero_plane = jnp.zeros((chunk_rows, lanes), jnp.float32)

    def chunk_step(s, carry):
        acc_i, acc_p, acc_t = carry
        r0 = s * chunk_rows
        if not isinstance(r0, int):
            r0 = pl.multiple_of(r0, chunk_rows)

        tgt = t_ref[0, 0, pl.ds(r0, chunk_rows), :]
        xs = [x_ref[0, ch, pl.ds(r0, chunk_rows), :].astype(jnp.float32)
              for ch in range(C)]

        if need_mask:
            rloc = jax.lax.broadcasted_iota(jnp.int32, (chunk_rows, lanes), 0)
            valid = (row_base + r0 + rloc) < valid_rows
            # Sanitize out-of-range garbage so max/exp stay finite.
            xs = [jnp.where(valid, xc, 0.0) for xc in xs]

        # Channel softmax, unrolled over class planes (pure elementwise VPU).
        m = xs[0]
        for xc in xs[1:]:
            m = jnp.maximum(m, xc)
        es = [jnp.exp(xc - m) for xc in xs]
        denom = es[0]
        for ec in es[1:]:
            denom = denom + ec
        inv = pl.reciprocal(denom, approx=True)
        inv = inv * (2.0 - denom * inv)       # one Newton step -> ~f32 accurate

        new_i, new_p, new_t = [], [], []
        for ch in range(C):
            prob = es[ch] * inv
            mask_c = tgt == ch
            if need_mask:
                mask_c = jnp.logical_and(mask_c, valid)
                prob_v = jnp.where(valid, prob, 0.0)
            else:
                prob_v = prob
            new_i.append(acc_i[ch] + jnp.where(mask_c, prob, 0.0))
            new_p.append(acc_p[ch] + prob_v)
            new_t.append(acc_t[ch] + jnp.where(mask_c, 1.0, 0.0))
        return tuple(new_i), tuple(new_p), tuple(new_t)

    init = (tuple(zero_plane for _ in range(C)),
            tuple(zero_plane for _ in range(C)),
            tuple(zero_plane for _ in range(C)))

    if n_chunks == 1:
        acc_i, acc_p, acc_t = chunk_step(0, init)
    else:
        acc_i, acc_p, acc_t = jax.lax.fori_loop(
            0, n_chunks, chunk_step, init, unroll=2)

    # One tiny read-modify-write per class per tile (accumulator lives in the
    # resident output block across the "arbitrary" tile axis).
    for ch in range(C):
        out_ref[0, 0, ch] = out_ref[0, 0, ch] + acc_i[ch]
        out_ref[0, 0, C + ch] = out_ref[0, 0, C + ch] + acc_p[ch]
        out_ref[0, 0, 2 * C + ch] = out_ref[0, 0, 2 * C + ch] + acc_t[ch]


def dice_only_loss(logits, target, *, num_classes=None, smooth=1e-10,
                   weight=None, idc=None, ignore_index=255,
                   rows_per_tile=None, pixel_groups=2):
    """logits: (b, c, h, w) float. target: (b, h, w) or (b, 1, h, w) int labels."""
    del ignore_index  # TODO(synk): unused in the reference forward math.
    b, C, h, w = logits.shape
    if num_classes is None:
        num_classes = C
    assert num_classes == C, "channel dim of logits must equal num_classes"
    if target.ndim == 4:
        target = target[:, 0]
    target = target.astype(jnp.int32)

    hw = h * w
    if hw % _LANES == 0:
        R, L = hw // _LANES, _LANES            # fully lane-dense layout
    else:
        R, L = h, w                            # native layout, no pad copy

    x4 = logits.reshape(b, C, R, L)            # both reshapes are free views
    t4 = target.reshape(b, 1, R, L)

    # Tile sizing: ~2 MiB of input per block (double-buffered -> ~4-5 MiB),
    # safe under the scoped VMEM default on v5e/v6e/v7x and scales with C.
    if rows_per_tile is None:
        bytes_per_row = (C * jnp.dtype(logits.dtype).itemsize + 4) * L
        rows_per_tile = max(8, min(1024, (2 << 20) // max(1, bytes_per_row)))

    if R <= rows_per_tile:
        tile_r = R                             # full extent of the dim
    else:
        tile_r = max(8, (rows_per_tile // 8) * 8)
    n_tiles = -(-R // tile_r)
    G = max(1, min(pixel_groups, n_tiles))     # pixel-group split (v7x 2 TCs)
    tpg = -(-n_tiles // G)
    chunk_r = 8 if tile_r >= 8 else tile_r
    n_chunks = -(-tile_r // chunk_r)
    need_mask = (G * tpg * tile_r != R) or (n_chunks * chunk_r != tile_r)
    last_tile = n_tiles - 1

    def in_map(bi, g, j):
        t = jnp.minimum(g * tpg + j, last_tile)   # clamp fully-OOB groups
        return (bi, 0, t, 0)

    def out_map(bi, g, j):
        return (bi, g, 0, 0, 0)

    kernel = functools.partial(
        _dice_sums_kernel,
        num_classes=C, tile_rows=tile_r, chunk_rows=chunk_r, lanes=L,
        n_chunks=n_chunks, tiles_per_group=tpg, valid_rows=R,
        need_mask=need_mask)

    out = pl.pallas_call(
        kernel,
        out_shape=jax.ShapeDtypeStruct((b, G, 3 * C, chunk_r, L), jnp.float32),
        grid_spec=pltpu.PrefetchScalarGridSpec(
            num_scalar_prefetch=0,
            grid=(b, G, tpg),
            in_specs=[
                pl.BlockSpec((1, C, tile_r, L), in_map),
                pl.BlockSpec((1, 1, tile_r, L), in_map),
            ],
            out_specs=pl.BlockSpec((1, 1, 3 * C, chunk_r, L), out_map),
        ),
        compiler_params=pltpu.CompilerParams(
            dimension_semantics=("parallel", "parallel", "arbitrary")),
    )(x4, t4)

    # Tiny final reductions / dice combine in plain JAX.
    sums = jnp.sum(out, axis=(1, 3, 4))        # (b, 3*C)
    inter = sums[:, :C]
    card_p = sums[:, C:2 * C]
    card_t = sums[:, 2 * C:]

    if idc is not None:
        idc = jnp.asarray(idc, dtype=jnp.int32)
        inter = inter[:, idc]
        card_p = card_p[:, idc]
        card_t = card_t[:, idc]

    dice = (2.0 * inter + smooth) / (card_p + card_t + smooth)
    per_class = 1.0 - dice
    if weight is not None:
        wvec = jnp.asarray(weight, dtype=jnp.float32)
        if idc is not None:
            wvec = wvec[idc]
        per_class = per_class * wvec[None, :]
        return jnp.mean(jnp.sum(per_class, axis=1) / jnp.sum(wvec))
    return jnp.mean(per_class)


def _reference_loss(logits, target, num_classes, smooth=1e-10):
    """Pure-JAX reference reproducing the PyTorch DiceLoss forward (defaults)."""
    probs = jax.nn.softmax(logits, axis=1)
    onehot = jax.nn.one_hot(target, num_classes, dtype=jnp.float32, axis=1)
    inter = jnp.sum(probs * onehot, axis=(2, 3))
    card_p = jnp.sum(probs, axis=(2, 3))
    card_t = jnp.sum(onehot, axis=(2, 3))
    dice = (2.0 * inter + smooth) / (card_p + card_t + smooth)
    return jnp.mean(1.0 - dice)


if __name__ == "__main__":
    key = jax.random.PRNGKey(0)
    k1, k2 = jax.random.split(key)

    b, c, h, w = 2, 4, 16, 16
    logits = jax.random.normal(k1, (b, c, h, w), dtype=jnp.float32)
    target = jax.random.randint(k2, (b, h, w), 0, c, dtype=jnp.int32)

    loss = dice_only_loss(logits, target, num_classes=c)
    loss = jax.block_until_ready(loss)

    ref = _reference_loss(logits, target, c)
    assert jnp.allclose(loss, ref, atol=1e-5, rtol=1e-5), (loss, ref)

    print("KERNEL_OK")
</pallas_src>

<mosaic_0001>
module attributes {stable_mosaic.version = 11 : i64} {
  func.func @_dice_sums_kernel(%arg0: i32, %arg1: i32, %arg2: i32, %arg3: memref<1x4x2x128xf32, #tpu.memory_space<vmem>>, %arg4: memref<1x1x2x128xi32, #tpu.memory_space<vmem>>, %arg5: memref<1x1x12x2x128xf32, #tpu.memory_space<vmem>>) attributes {dimension_semantics = [#tpu.dimension_semantics<parallel>, #tpu.dimension_semantics<parallel>, #tpu.dimension_semantics<arbitrary>], iteration_bounds = array<i64: 2, 1, 1>, scalar_prefetch = 0 : i64, scratch_operands = 0 : i64, tpu.core_type = #tpu.core_type<tc>, window_params = [{transform_indices = @transform_0, window_bounds = array<i64: 1, 4, 2, 128>}, {transform_indices = @transform_1, window_bounds = array<i64: 1, 1, 2, 128>}, {transform_indices = @transform_2, window_bounds = array<i64: 1, 1, 12, 2, 128>}]} {
    %c0_i32 = arith.constant 0 : i32
    %0 = arith.cmpi eq, %arg2, %c0_i32 : i32
    %1 = arith.extui %0 : i1 to i32
    %c0_i32_0 = arith.constant 0 : i32
    %2 = arith.cmpi ne, %1, %c0_i32_0 : i32
    scf.if %2 {
      %cst_143 = arith.constant 0.000000e+00 : f32
      %149 = vector.broadcast %cst_143 : f32 to vector<1x1x12x2x128xf32>
      %c0_144 = arith.constant 0 : index
      %c0_145 = arith.constant 0 : index
      %c0_146 = arith.constant 0 : index
      %c0_147 = arith.constant 0 : index
      %c0_148 = arith.constant 0 : index
      %150 = vector.load %arg5[%c0_144, %c0_145, %c0_146, %c0_147, %c0_148] : memref<1x1x12x2x128xf32, #tpu.memory_space<vmem>>, vector<1x1x12x2x128xf32>
      tpu.vector_store %arg5[%c0_144, %c0_145, %c0_146, %c0_147, %c0_148], %149 {strides = array<i32>} : memref<1x1x12x2x128xf32, #tpu.memory_space<vmem>>, vector<1x1x12x2x128xf32>,
    } else {
    }
    %cst = arith.constant 0.000000e+00 : f32
    %3 = vector.broadcast %cst : f32 to vector<2x128xf32>
    %c0 = arith.constant 0 : index
    %c0_1 = arith.constant 0 : index
    %c0_2 = arith.constant 0 : index
    %c0_3 = arith.constant 0 : index
    %4 = vector.load %arg4[%c0, %c0_1, %c0_2, %c0_3] : memref<1x1x2x128xi32, #tpu.memory_space<vmem>>, vector<1x1x2x128xi32>
    %5 = vector.shape_cast %4 : vector<1x1x2x128xi32> to vector<2x128xi32>
    %c0_4 = arith.constant 0 : index
    %c0_5 = arith.constant 0 : index
    %c0_6 = arith.constant 0 : index
    %c0_7 = arith.constant 0 : index
    %6 = vector.load %arg3[%c0_4, %c0_5, %c0_6, %c0_7] : memref<1x4x2x128xf32, #tpu.memory_space<vmem>>, vector<1x1x2x128xf32>
    %7 = vector.shape_cast %6 : vector<1x1x2x128xf32> to vector<2x128xf32>
    %c0_8 = arith.constant 0 : index
    %c1 = arith.constant 1 : index
    %c0_9 = arith.constant 0 : index
    %c0_10 = arith.constant 0 : index
    %8 = vector.load %arg3[%c0_8, %c1, %c0_9, %c0_10] : memref<1x4x2x128xf32, #tpu.memory_space<vmem>>, vector<1x1x2x128xf32>
    %9 = vector.shape_cast %8 : vector<1x1x2x128xf32> to vector<2x128xf32>
    %c0_11 = arith.constant 0 : index
    %c2 = arith.constant 2 : index
    %c0_12 = arith.constant 0 : index
    %c0_13 = arith.constant 0 : index
    %10 = vector.load %arg3[%c0_11, %c2, %c0_12, %c0_13] : memref<1x4x2x128xf32, #tpu.memory_space<vmem>>, vector<1x1x2x128xf32>
    %11 = vector.shape_cast %10 : vector<1x1x2x128xf32> to vector<2x128xf32>
    %c0_14 = arith.constant 0 : index
    %c3 = arith.constant 3 : index
    %c0_15 = arith.constant 0 : index
    %c0_16 = arith.constant 0 : index
    %12 = vector.load %arg3[%c0_14, %c3, %c0_15, %c0_16] : memref<1x4x2x128xf32, #tpu.memory_space<vmem>>, vector<1x1x2x128xf32>
    %13 = vector.shape_cast %12 : vector<1x1x2x128xf32> to vector<2x128xf32>
    %14 = arith.maximumf %7, %9 : vector<2x128xf32>
    %15 = arith.maximumf %14, %11 : vector<2x128xf32>
    %16 = arith.maximumf %15, %13 : vector<2x128xf32>
    %17 = arith.subf %7, %16 : vector<2x128xf32>
    %18 = math.exp %17 : vector<2x128xf32>
    %19 = arith.subf %9, %16 : vector<2x128xf32>
    %20 = math.exp %19 : vector<2x128xf32>
    %21 = arith.subf %11, %16 : vector<2x128xf32>
    %22 = math.exp %21 : vector<2x128xf32>
    %23 = arith.subf %13, %16 : vector<2x128xf32>
    %24 = math.exp %23 : vector<2x128xf32>
    %25 = arith.addf %18, %20 : vector<2x128xf32>
    %26 = arith.addf %25, %22 : vector<2x128xf32>
    %27 = arith.addf %26, %24 : vector<2x128xf32>
    %28 = tpu.reciprocal %27 {approx = true} : vector<2x128xf32> -> vector<2x128xf32>
    %29 = arith.mulf %27, %28 : vector<2x128xf32>
    %cst_17 = arith.constant 2.000000e+00 : f32
    %30 = vector.broadcast %cst_17 : f32 to vector<2x128xf32>
    %31 = arith.subf %30, %29 : vector<2x128xf32>
    %32 = arith.mulf %28, %31 : vector<2x128xf32>
    %33 = arith.mulf %18, %32 : vector<2x128xf32>
    %c0_i32_18 = arith.constant 0 : i32
    %34 = vector.broadcast %c0_i32_18 : i32 to vector<2x128xi32>
    %35 = arith.cmpi eq, %5, %34 : vector<2x128xi32>
    %cst_19 = arith.constant 0.000000e+00 : f32
    %36 = vector.broadcast %cst_19 : f32 to vector<2x128xf32>
    %37 = arith.select %35, %33, %36 : vector<2x128xi1>, vector<2x128xf32>
    %38 = arith.addf %3, %37 : vector<2x128xf32>
    %39 = arith.addf %3, %33 : vector<2x128xf32>
    %cst_20 = arith.constant 1.000000e+00 : f32
    %cst_21 = arith.constant 0.000000e+00 : f32
    %40 = vector.broadcast %cst_20 : f32 to vector<2x128xf32>
    %41 = vector.broadcast %cst_21 : f32 to vector<2x128xf32>
    %42 = arith.select %35, %40, %41 : vector<2x128xi1>, vector<2x128xf32>
    %43 = arith.addf %3, %42 : vector<2x128xf32>
    %44 = arith.mulf %20, %32 : vector<2x128xf32>
    %c1_i32 = arith.constant 1 : i32
    %45 = vector.broadcast %c1_i32 : i32 to vector<2x128xi32>
    %46 = arith.cmpi eq, %5, %45 : vector<2x128xi32>
    %cst_22 = arith.constant 0.000000e+00 : f32
    %47 = vector.broadcast %cst_22 : f32 to vector<2x128xf32>
    %48 = arith.select %46, %44, %47 : vector<2x128xi1>, vector<2x128xf32>
    %49 = arith.addf %3, %48 : vector<2x128xf32>
    %50 = arith.addf %3, %44 : vector<2x128xf32>
    %cst_23 = arith.constant 1.000000e+00 : f32
    %cst_24 = arith.constant 0.000000e+00 : f32
    %51 = vector.broadcast %cst_23 : f32 to vector<2x128xf32>
    %52 = vector.broadcast %cst_24 : f32 to vector<2x128xf32>
    %53 = arith.select %46, %51, %52 : vector<2x128xi1>, vector<2x128xf32>
    %54 = arith.addf %3, %53 : vector<2x128xf32>
    %55 = arith.mulf %22, %32 : vector<2x128xf32>
    %c2_i32 = arith.constant 2 : i32
    %56 = vector.broadcast %c2_i32 : i32 to vector<2x128xi32>
    %57 = arith.cmpi eq, %5, %56 : vector<2x128xi32>
    %cst_25 = arith.constant 0.000000e+00 : f32
    %58 = vector.broadcast %cst_25 : f32 to vector<2x128xf32>
    %59 = arith.select %57, %55, %58 : vector<2x128xi1>, vector<2x128xf32>
    %60 = arith.addf %3, %59 : vector<2x128xf32>
    %61 = arith.addf %3, %55 : vector<2x128xf32>
    %cst_26 = arith.constant 1.000000e+00 : f32
    %cst_27 = arith.constant 0.000000e+00 : f32
    %62 = vector.broadcast %cst_26 : f32 to vector<2x128xf32>
    %63 = vector.broadcast %cst_27 : f32 to vector<2x128xf32>
    %64 = arith.select %57, %62, %63 : vector<2x128xi1>, vector<2x128xf32>
    %65 = arith.addf %3, %64 : vector<2x128xf32>
    %66 = arith.mulf %24, %32 : vector<2x128xf32>
    %c3_i32 = arith.constant 3 : i32
    %67 = vector.broadcast %c3_i32 : i32 to vector<2x128xi32>
    %68 = arith.cmpi eq, %5, %67 : vector<2x128xi32>
    %cst_28 = arith.constant 0.000000e+00 : f32
    %69 = vector.broadcast %cst_28 : f32 to vector<2x128xf32>
    %70 = arith.select %68, %66, %69 : vector<2x128xi1>, vector<2x128xf32>
    %71 = arith.addf %3, %70 : vector<2x128xf32>
    %72 = arith.addf %3, %66 : vector<2x128xf32>
    %cst_29 = arith.constant 1.000000e+00 : f32
    %cst_30 = arith.constant 0.000000e+00 : f32
    %73 = vector.broadcast %cst_29 : f32 to vector<2x128xf32>
    %74 = vector.broadcast %cst_30 : f32 to vector<2x128xf32>
    %75 = arith.select %68, %73, %74 : vector<2x128xi1>, vector<2x128xf32>
    %76 = arith.addf %3, %75 : vector<2x128xf32>
    %c0_31 = arith.constant 0 : index
    %c0_32 = arith.constant 0 : index
    %c0_33 = arith.constant 0 : index
    %c0_34 = arith.constant 0 : index
    %c0_35 = arith.constant 0 : index
    %77 = vector.load %arg5[%c0_31, %c0_32, %c0_33, %c0_34, %c0_35] : memref<1x1x12x2x128xf32, #tpu.memory_space<vmem>>, vector<1x1x1x2x128xf32>
    %78 = vector.shape_cast %77 : vector<1x1x1x2x128xf32> to vector<2x128xf32>
    %79 = arith.addf %78, %38 : vector<2x128xf32>
    %c0_36 = arith.constant 0 : index
    %c0_37 = arith.constant 0 : index
    %c0_38 = arith.constant 0 : index
    %c0_39 = arith.constant 0 : index
    %c0_40 = arith.constant 0 : index
    %80 = vector.load %arg5[%c0_36, %c0_37, %c0_38, %c0_39, %c0_40] : memref<1x1x12x2x128xf32, #tpu.memory_space<vmem>>, vector<1x1x1x2x128xf32>
    %81 = vector.shape_cast %80 : vector<1x1x1x2x128xf32> to vector<2x128xf32>
    %82 = vector.shape_cast %79 : vector<2x128xf32> to vector<1x1x1x2x128xf32>
    tpu.vector_store %arg5[%c0_36, %c0_37, %c0_38, %c0_39, %c0_40], %82 {strides = array<i32>} : memref<1x1x12x2x128xf32, #tpu.memory_space<vmem>>, vector<1x1x1x2x128xf32>,
    %c0_41 = arith.constant 0 : index
    %c0_42 = arith.constant 0 : index
    %c4 = arith.constant 4 : index
    %c0_43 = arith.constant 0 : index
    %c0_44 = arith.constant 0 : index
    %83 = vector.load %arg5[%c0_41, %c0_42, %c4, %c0_43, %c0_44] : memref<1x1x12x2x128xf32, #tpu.memory_space<vmem>>, vector<1x1x1x2x128xf32>
    %84 = vector.shape_cast %83 : vector<1x1x1x2x128xf32> to vector<2x128xf32>
    %85 = arith.addf %84, %39 : vector<2x128xf32>
    %c0_45 = arith.constant 0 : index
    %c0_46 = arith.constant 0 : index
    %c4_47 = arith.constant 4 : index
    %c0_48 = arith.constant 0 : index
    %c0_49 = arith.constant 0 : index
    %86 = vector.load %arg5[%c0_45, %c0_46, %c4_47, %c0_48, %c0_49] : memref<1x1x12x2x128xf32, #tpu.memory_space<vmem>>, vector<1x1x1x2x128xf32>
    %87 = vector.shape_cast %86 : vector<1x1x1x2x128xf32> to vector<2x128xf32>
    %88 = vector.shape_cast %85 : vector<2x128xf32> to vector<1x1x1x2x128xf32>
    tpu.vector_store %arg5[%c0_45, %c0_46, %c4_47, %c0_48, %c0_49], %88 {strides = array<i32>} : memref<1x1x12x2x128xf32, #tpu.memory_space<vmem>>, vector<1x1x1x2x128xf32>,
    %c0_50 = arith.constant 0 : index
    %c0_51 = arith.constant 0 : index
    %c8 = arith.constant 8 : index
    %c0_52 = arith.constant 0 : index
    %c0_53 = arith.constant 0 : index
    %89 = vector.load %arg5[%c0_50, %c0_51, %c8, %c0_52, %c0_53] : memref<1x1x12x2x128xf32, #tpu.memory_space<vmem>>, vector<1x1x1x2x128xf32>
    %90 = vector.shape_cast %89 : vector<1x1x1x2x128xf32> to vector<2x128xf32>
    %91 = arith.addf %90, %43 : vector<2x128xf32>
    %c0_54 = arith.constant 0 : index
    %c0_55 = arith.constant 0 : index
    %c8_56 = arith.constant 8 : index
    %c0_57 = arith.constant 0 : index
    %c0_58 = arith.constant 0 : index
    %92 = vector.load %arg5[%c0_54, %c0_55, %c8_56, %c0_57, %c0_58] : memref<1x1x12x2x128xf32, #tpu.memory_space<vmem>>, vector<1x1x1x2x128xf32>
    %93 = vector.shape_cast %92 : vector<1x1x1x2x128xf32> to vector<2x128xf32>
    %94 = vector.shape_cast %91 : vector<2x128xf32> to vector<1x1x1x2x128xf32>
    tpu.vector_store %arg5[%c0_54, %c0_55, %c8_56, %c0_57, %c0_58], %94 {strides = array<i32>} : memref<1x1x12x2x128xf32, #tpu.memory_space<vmem>>, vector<1x1x1x2x128xf32>,
    %c0_59 = arith.constant 0 : index
    %c0_60 = arith.constant 0 : index
    %c1_61 = arith.constant 1 : index
    %c0_62 = arith.constant 0 : index
    %c0_63 = arith.constant 0 : index
    %95 = vector.load %arg5[%c0_59, %c0_60, %c1_61, %c0_62, %c0_63] : memref<1x1x12x2x128xf32, #tpu.memory_space<vmem>>, vector<1x1x1x2x128xf32>
    %96 = vector.shape_cast %95 : vector<1x1x1x2x128xf32> to vector<2x128xf32>
    %97 = arith.addf %96, %49 : vector<2x128xf32>
    %c0_64 = arith.constant 0 : index
    %c0_65 = arith.constant 0 : index
    %c1_66 = arith.constant 1 : index
    %c0_67 = arith.constant 0 : index
    %c0_68 = arith.constant 0 : index
    %98 = vector.load %arg5[%c0_64, %c0_65, %c1_66, %c0_67, %c0_68] : memref<1x1x12x2x128xf32, #tpu.memory_space<vmem>>, vector<1x1x1x2x128xf32>
    %99 = vector.shape_cast %98 : vector<1x1x1x2x128xf32> to vector<2x128xf32>
    %100 = vector.shape_cast %97 : vector<2x128xf32> to vector<1x1x1x2x128xf32>
    tpu.vector_store %arg5[%c0_64, %c0_65, %c1_66, %c0_67, %c0_68], %100 {strides = array<i32>} : memref<1x1x12x2x128xf32, #tpu.memory_space<vmem>>, vector<1x1x1x2x128xf32>,
    %c0_69 = arith.constant 0 : index
    %c0_70 = arith.constant 0 : index
    %c5 = arith.constant 5 : index
    %c0_71 = arith.constant 0 : index
    %c0_72 = arith.constant 0 : index
    %101 = vector.load %arg5[%c0_69, %c0_70, %c5, %c0_71, %c0_72] : memref<1x1x12x2x128xf32, #tpu.memory_space<vmem>>, vector<1x1x1x2x128xf32>
    %102 = vector.shape_cast %101 : vector<1x1x1x2x128xf32> to vector<2x128xf32>
    %103 = arith.addf %102, %50 : vector<2x128xf32>
    %c0_73 = arith.constant 0 : index
    %c0_74 = arith.constant 0 : index
    %c5_75 = arith.constant 5 : index
    %c0_76 = arith.constant 0 : index
    %c0_77 = arith.constant 0 : index
    %104 = vector.load %arg5[%c0_73, %c0_74, %c5_75, %c0_76, %c0_77] : memref<1x1x12x2x128xf32, #tpu.memory_space<vmem>>, vector<1x1x1x2x128xf32>
    %105 = vector.shape_cast %104 : vector<1x1x1x2x128xf32> to vector<2x128xf32>
    %106 = vector.shape_cast %103 : vector<2x128xf32> to vector<1x1x1x2x128xf32>
    tpu.vector_store %arg5[%c0_73, %c0_74, %c5_75, %c0_76, %c0_77], %106 {strides = array<i32>} : memref<1x1x12x2x128xf32, #tpu.memory_space<vmem>>, vector<1x1x1x2x128xf32>,
    %c0_78 = arith.constant 0 : index
    %c0_79 = arith.constant 0 : index
    %c9 = arith.constant 9 : index
    %c0_80 = arith.constant 0 : index
    %c0_81 = arith.constant 0 : index
    %107 = vector.load %arg5[%c0_78, %c0_79, %c9, %c0_80, %c0_81] : memref<1x1x12x2x128xf32, #tpu.memory_space<vmem>>, vector<1x1x1x2x128xf32>
    %108 = vector.shape_cast %107 : vector<1x1x1x2x128xf32> to vector<2x128xf32>
    %109 = arith.addf %108, %54 : vector<2x128xf32>
    %c0_82 = arith.constant 0 : index
    %c0_83 = arith.constant 0 : index
    %c9_84 = arith.constant 9 : index
    %c0_85 = arith.constant 0 : index
    %c0_86 = arith.constant 0 : index
    %110 = vector.load %arg5[%c0_82, %c0_83, %c9_84, %c0_85, %c0_86] : memref<1x1x12x2x128xf32, #tpu.memory_space<vmem>>, vector<1x1x1x2x128xf32>
    %111 = vector.shape_cast %110 : vector<1x1x1x2x128xf32> to vector<2x128xf32>
    %112 = vector.shape_cast %109 : vector<2x128xf32> to vector<1x1x1x2x128xf32>
    tpu.vector_store %arg5[%c0_82, %c0_83, %c9_84, %c0_85, %c0_86], %112 {strides = array<i32>} : memref<1x1x12x2x128xf32, #tpu.memory_space<vmem>>, vector<1x1x1x2x128xf32>,
    %c0_87 = arith.constant 0 : index
    %c0_88 = arith.constant 0 : index
    %c2_89 = arith.constant 2 : index
    %c0_90 = arith.constant 0 : index
    %c0_91 = arith.constant 0 : index
    %113 = vector.load %arg5[%c0_87, %c0_88, %c2_89, %c0_90, %c0_91] : memref<1x1x12x2x128xf32, #tpu.memory_space<vmem>>, vector<1x1x1x2x128xf32>
    %114 = vector.shape_cast %113 : vector<1x1x1x2x128xf32> to vector<2x128xf32>
    %115 = arith.addf %114, %60 : vector<2x128xf32>
    %c0_92 = arith.constant 0 : index
    %c0_93 = arith.constant 0 : index
    %c2_94 = arith.constant 2 : index
    %c0_95 = arith.constant 0 : index
    %c0_96 = arith.constant 0 : index
    %116 = vector.load %arg5[%c0_92, %c0_93, %c2_94, %c0_95, %c0_96] : memref<1x1x12x2x128xf32, #tpu.memory_space<vmem>>, vector<1x1x1x2x128xf32>
    %117 = vector.shape_cast %116 : vector<1x1x1x2x128xf32> to vector<2x128xf32>
    %118 = vector.shape_cast %115 : vector<2x128xf32> to vector<1x1x1x2x128xf32>
    tpu.vector_store %arg5[%c0_92, %c0_93, %c2_94, %c0_95, %c0_96], %118 {strides = array<i32>} : memref<1x1x12x2x128xf32, #tpu.memory_space<vmem>>, vector<1x1x1x2x128xf32>,
    %c0_97 = arith.constant 0 : index
    %c0_98 = arith.constant 0 : index
    %c6 = arith.constant 6 : index
    %c0_99 = arith.constant 0 : index
    %c0_100 = arith.constant 0 : index
    %119 = vector.load %arg5[%c0_97, %c0_98, %c6, %c0_99, %c0_100] : memref<1x1x12x2x128xf32, #tpu.memory_space<vmem>>, vector<1x1x1x2x128xf32>
    %120 = vector.shape_cast %119 : vector<1x1x1x2x128xf32> to vector<2x128xf32>
    %121 = arith.addf %120, %61 : vector<2x128xf32>
    %c0_101 = arith.constant 0 : index
    %c0_102 = arith.constant 0 : index
    %c6_103 = arith.constant 6 : index
    %c0_104 = arith.constant 0 : index
    %c0_105 = arith.constant 0 : index
    %122 = vector.load %arg5[%c0_101, %c0_102, %c6_103, %c0_104, %c0_105] : memref<1x1x12x2x128xf32, #tpu.memory_space<vmem>>, vector<1x1x1x2x128xf32>
    %123 = vector.shape_cast %122 : vector<1x1x1x2x128xf32> to vector<2x128xf32>
    %124 = vector.shape_cast %121 : vector<2x128xf32> to vector<1x1x1x2x128xf32>
    tpu.vector_store %arg5[%c0_101, %c0_102, %c6_103, %c0_104, %c0_105], %124 {strides = array<i32>} : memref<1x1x12x2x128xf32, #tpu.memory_space<vmem>>, vector<1x1x1x2x128xf32>,
    %c0_106 = arith.constant 0 : index
    %c0_107 = arith.constant 0 : index
    %c10 = arith.constant 10 : index
    %c0_108 = arith.constant 0 : index
    %c0_109 = arith.constant 0 : index
    %125 = vector.load %arg5[%c0_106, %c0_107, %c10, %c0_108, %c0_109] : memref<1x1x12x2x128xf32, #tpu.memory_space<vmem>>, vector<1x1x1x2x128xf32>
    %126 = vector.shape_cast %125 : vector<1x1x1x2x128xf32> to vector<2x128xf32>
    %127 = arith.addf %126, %65 : vector<2x128xf32>
    %c0_110 = arith.constant 0 : index
    %c0_111 = arith.constant 0 : index
    %c10_112 = arith.constant 10 : index
    %c0_113 = arith.constant 0 : index
    %c0_114 = arith.constant 0 : index
    %128 = vector.load %arg5[%c0_110, %c0_111, %c10_112, %c0_113, %c0_114] : memref<1x1x12x2x128xf32, #tpu.memory_space<vmem>>, vector<1x1x1x2x128xf32>
    %129 = vector.shape_cast %128 : vector<1x1x1x2x128xf32> to vector<2x128xf32>
    %130 = vector.shape_cast %127 : vector<2x128xf32> to vector<1x1x1x2x128xf32>
    tpu.vector_store %arg5[%c0_110, %c0_111, %c10_112, %c0_113, %c0_114], %130 {strides = array<i32>} : memref<1x1x12x2x128xf32, #tpu.memory_space<vmem>>, vector<1x1x1x2x128xf32>,
    %c0_115 = arith.constant 0 : index
    %c0_116 = arith.constant 0 : index
    %c3_117 = arith.constant 3 : index
    %c0_118 = arith.constant 0 : index
    %c0_119 = arith.constant 0 : index
    %131 = vector.load %arg5[%c0_115, %c0_116, %c3_117, %c0_118, %c0_119] : memref<1x1x12x2x128xf32, #tpu.memory_space<vmem>>, vector<1x1x1x2x128xf32>
    %132 = vector.shape_cast %131 : vector<1x1x1x2x128xf32> to vector<2x128xf32>
    %133 = arith.addf %132, %71 : vector<2x128xf32>
    %c0_120 = arith.constant 0 : index
    %c0_121 = arith.constant 0 : index
    %c3_122 = arith.constant 3 : index
    %c0_123 = arith.constant 0 : index
    %c0_124 = arith.constant 0 : index
    %134 = vector.load %arg5[%c0_120, %c0_121, %c3_122, %c0_123, %c0_124] : memref<1x1x12x2x128xf32, #tpu.memory_space<vmem>>, vector<1x1x1x2x128xf32>
    %135 = vector.shape_cast %134 : vector<1x1x1x2x128xf32> to vector<2x128xf32>
    %136 = vector.shape_cast %133 : vector<2x128xf32> to vector<1x1x1x2x128xf32>
    tpu.vector_store %arg5[%c0_120, %c0_121, %c3_122, %c0_123, %c0_124], %136 {strides = array<i32>} : memref<1x1x12x2x128xf32, #tpu.memory_space<vmem>>, vector<1x1x1x2x128xf32>,
    %c0_125 = arith.constant 0 : index
    %c0_126 = arith.constant 0 : index
    %c7 = arith.constant 7 : index
    %c0_127 = arith.constant 0 : index
    %c0_128 = arith.constant 0 : index
    %137 = vector.load %arg5[%c0_125, %c0_126, %c7, %c0_127, %c0_128] : memref<1x1x12x2x128xf32, #tpu.memory_space<vmem>>, vector<1x1x1x2x128xf32>
    %138 = vector.shape_cast %137 : vector<1x1x1x2x128xf32> to vector<2x128xf32>
    %139 = arith.addf %138, %72 : vector<2x128xf32>
    %c0_129 = arith.constant 0 : index
    %c0_130 = arith.constant 0 : index
    %c7_131 = arith.constant 7 : index
    %c0_132 = arith.constant 0 : index
    %c0_133 = arith.constant 0 : index
    %140 = vector.load %arg5[%c0_129, %c0_130, %c7_131, %c0_132, %c0_133] : memref<1x1x12x2x128xf32, #tpu.memory_space<vmem>>, vector<1x1x1x2x128xf32>
    %141 = vector.shape_cast %140 : vector<1x1x1x2x128xf32> to vector<2x128xf32>
    %142 = vector.shape_cast %139 : vector<2x128xf32> to vector<1x1x1x2x128xf32>
    tpu.vector_store %arg5[%c0_129, %c0_130, %c7_131, %c0_132, %c0_133], %142 {strides = array<i32>} : memref<1x1x12x2x128xf32, #tpu.memory_space<vmem>>, vector<1x1x1x2x128xf32>,
    %c0_134 = arith.constant 0 : index
    %c0_135 = arith.constant 0 : index
    %c11 = arith.constant 11 : index
    %c0_136 = arith.constant 0 : index
    %c0_137 = arith.constant 0 : index
    %143 = vector.load %arg5[%c0_134, %c0_135, %c11, %c0_136, %c0_137] : memref<1x1x12x2x128xf32, #tpu.memory_space<vmem>>, vector<1x1x1x2x128xf32>
    %144 = vector.shape_cast %143 : vector<1x1x1x2x128xf32> to vector<2x128xf32>
    %145 = arith.addf %144, %76 : vector<2x128xf32>
    %c0_138 = arith.constant 0 : index
    %c0_139 = arith.constant 0 : index
    %c11_140 = arith.constant 11 : index
    %c0_141 = arith.constant 0 : index
    %c0_142 = arith.constant 0 : index
    %146 = vector.load %arg5[%c0_138, %c0_139, %c11_140, %c0_141, %c0_142] : memref<1x1x12x2x128xf32, #tpu.memory_space<vmem>>, vector<1x1x1x2x128xf32>
    %147 = vector.shape_cast %146 : vector<1x1x1x2x128xf32> to vector<2x128xf32>
    %148 = vector.shape_cast %145 : vector<2x128xf32> to vector<1x1x1x2x128xf32>
    tpu.vector_store %arg5[%c0_138, %c0_139, %c11_140, %c0_141, %c0_142], %148 {strides = array<i32>} : memref<1x1x12x2x128xf32, #tpu.memory_space<vmem>>, vector<1x1x1x2x128xf32>,
    return
  }
  func.func @transform_0(%arg0: i32, %arg1: i32, %arg2: i32) -> (i32, i32, i32, i32) {
    %c1_i32 = arith.constant 1 : i32
    %0 = arith.muli %arg1, %c1_i32 : i32
    %1 = arith.addi %0, %arg2 : i32
    %c0_i32 = arith.constant 0 : i32
    %2 = arith.minsi %1, %c0_i32 : i32
    %c0_i32_0 = arith.constant 0 : i32
    %c0_i32_1 = arith.constant 0 : i32
    %c0_i32_2 = arith.constant 0 : i32
    return %arg0, %c0_i32_0, %2, %c0_i32_1 : i32, i32, i32, i32
  }
  func.func @transform_1(%arg0: i32, %arg1: i32, %arg2: i32) -> (i32, i32, i32, i32) {
    %c1_i32 = arith.constant 1 : i32
    %0 = arith.muli %arg1, %c1_i32 : i32
    %1 = arith.addi %0, %arg2 : i32
    %c0_i32 = arith.constant 0 : i32
    %2 = arith.minsi %1, %c0_i32 : i32
    %c0_i32_0 = arith.constant 0 : i32
    %c0_i32_1 = arith.constant 0 : i32
    %c0_i32_2 = arith.constant 0 : i32
    return %arg0, %c0_i32_0, %2, %c0_i32_1 : i32, i32, i32, i32
  }
  func.func @transform_2(%arg0: i32, %arg1: i32, %arg2: i32) -> (i32, i32, i32, i32, i32) {
    %c0_i32 = arith.constant 0 : i32
    %c0_i32_0 = arith.constant 0 : i32
    %c0_i32_1 = arith.constant 0 : i32
    %c0_i32_2 = arith.constant 0 : i32
    return %arg0, %arg1, %c0_i32, %c0_i32_0, %c0_i32_1 : i32, i32, i32, i32, i32
  }
}

</mosaic_0001>

<bundles_post_ra>
// kernel: tpu_custom_call.1
= control target key start
LH: loop header
LB: loop body
LE: loop exit
PB: predicated region body
PF: predicated region fallthrough
CT: control target
= control target key end

     0   :  { %7 = vsyncpa [#allocation3], 0  ;;  %s1075_s0 = inlined_call_operand.hbm [shape: f32[2,4,2,128], index: 0, kind: input, shape index: {}]   ;;  %s1076_s1 = inlined_call_operand.hbm [shape: s32[2,1,2,128], index: 1, kind: input, shape index: {}]   ;;  %s1077_s2 = inlined_call_operand.hbm [shape: f32[2,1,12,2,128], index: 2, kind: output, shape index: {}]  }
   0x1   :  { %9 = vsyncpa [#allocation3 + $0x1], 0 }
   0x2   :  { %10 = vsyncpa [#allocation6], 0 }
   0x3   :  { %12 = vsyncpa [#allocation6 + $0x1], 0 }
   0x4   :  { %13 = vsyncpa [#allocation4], 0 }
   0x5   :  { %15 = vsyncpa [#allocation4 + $0x1], 0  ;;  %s796_s9 = smov 0   ;;  %s798_s10 = smov 0  }
   0x6   :  { %s800_s11 = smov 0   ;;  %s802_s12 = smov 0  }
   0x7   :  { %s804_s13 = smov 0   ;;  %s806_s14 = smov 0  }
   0x8 LB: > { %s500_s15 = sadd.s32 4294967295, %s771_s14   ;;  %s501_s16 = sadd.s32 4294967294, %s771_s14   ;;  %s771_s14 = sphi %s806_s14, %s21_s14   ;;  %s767_s13 = sphi %s804_s13, %s1096_s13   ;;  %s763_s12 = sphi %s802_s12, %s1095_s12   ;;  %s759_s11 = sphi %s800_s11, %s1094_s11   ;;  %s755_s10 = sphi %s798_s10, %s1093_s10   ;;  %s751_s9 = sphi %s796_s9, %s1092_s9  }
   0x9   : > { %s40_s17 = sadd.s32 1, %s767_s13  ;;  %s55_s18 = sadd.s32 1, %s759_s11 }
   0xa   : > { %p42_p0 = scmp.ge.s32.totalorder %s40_s17, 2  ;;  %p62_p1 = scmp.ne.s32.totalorder %s759_s11, %s755_s10 }
   0xb   : > { %p63_p2 = scmp.eq.s32.totalorder %s771_s14, 0  ;;  %p68_p3 = scmp.ne.s32.totalorder %s755_s10, %s751_s9 }
   0xc   : > { %s1098_s17 = smov (%p42_p0, %s40_s17), 0  ;;  %p69_p5 = scmp.eq.s32.totalorder %s500_s15, 0 }
   0xd   : > { %p837_p4 = por %p63_p2, %p62_p1  ;;  %s50_s20 = ssub.s32 %s767_s13, %s1098_s17 }
   0xe   : > { %p128_p6 = scmp.eq.s32.totalorder %s500_s15, 1  ;;  %p53_p7 = scmp.eq.s32.totalorder %s50_s20, 0 }
   0xf   : > { %p843_p8 = por %p69_p5, %p68_p3  ;;  %p134_p10 = scmp.eq.s32.totalorder %s501_s16, 1 }
  0x10   : > { %p847_p9 = por %p128_p6, %p62_p1  ;;  %p560_p13 = scmp.lt.s32.totalorder %s771_s14, 2 }
  0x11   : > { %s1081_s21 = scalar_select %p843_p8, 1, 0 }
  0x12   : > { %s1082_s22 = scalar_select %p847_p9, 1, 0 }
  0x13   : > { %s852_s23 = scalar_select %p53_p7, %s759_s11, %s55_s18  }
  0x14   : > { %p854_p11 = por %p134_p10, %p68_p3  ;;  %s861_s25 = sand.u32 1, %s759_s11  }
  0x15   : > { %s504_s26 = sshll.u32 %s861_s25, 3  ;;  %s540_s27 = sshll.u32 %s767_s13, 7 }
  0x16   : > { %s1083_s24 = scalar_select %p854_p11, 1, 0 }
  0x17   : > { %s868_s30 = scalar_lea.hbm %s1075_s0, %s540_s27  ;;  %s158_s3 = scalar_lea.vmem [#allocation2], %s504_s26 }
  0x18   : > { %s169_s4 = sshll.u32 %s158_s3, 4  ;;  %p874_p0 = pnand %p560_p13, %p837_p4  ;;  %s870_s4 = int_to_ptr.vmem [resolvable:$true] %s169_s4 }
  0x19   : > { %s155_s6 = scalar_lea.sflag [#allocation3], %s861_s25  ;;  %s625_s7 = scalar_lea.hbm %s868_s30, 128 }
  0x1a   : > { %p626_p2 = scmp.ne.s32.totalorder %s868_s30, %s625_s7  ;;  %p627_p3 = pneg %p874_p0 }
  0x1b   : > { %s630_s16 = scalar_lea.hbm %s1075_s0, 256  ;;  %p631_p4 = scmp.lt.u32.totalorder %s868_s30, %s1075_s0 }
  0x1c   : > { %p628_p5 = pnand %p627_p3, %p626_p2  ;;  %p632_p7 = scmp.lt.u32.totalorder %s630_s16, %s625_s7 }
  0x1d   : > { %p634_p13 = scmp.lt.u32.totalorder %s625_s7, %s868_s30 }
  0x1e   : > { %p629_p6 = pneg %p628_p5  ;;  %p633_p10 = por %p632_p7, %p631_p4 }
  0x20   : > { %p635_p12 = por %p634_p13, %p633_p10 }
  0x22   : > { %p636_p1 = pnand %p635_p12, %p629_p6 }
  0x24   : > { %639 = shalt.err (!%p636_p1)
}
  0x25   : > { %s640_s20 = scalar_lea.vmem %s870_s4, 128  ;;  %s773_s26 = smov [#allocation2]  }
  0x26   : > { %p641_p2 = scmp.ne.s32.totalorder %s870_s4, %s640_s20  ;;  %s645_s27 = sshll.u32 %s773_s26, 4  ;;  %s646_s27 = int_to_ptr.vmem [resolvable:$false] %s645_s27 }
  0x27   : > { %s647_s28 = scalar_lea.vmem %s646_s27, 256  ;;  %p648_p9 = scmp.lt.s32.totalorder %s870_s4, %s646_s27 }
  0x28   : > { %p643_p5 = pnand %p641_p2, %p627_p3  ;;  %p649_p4 = scmp.lt.s32.totalorder %s647_s28, %s640_s20 }
  0x2a   : > { %p644_p11 = pneg %p643_p5  ;;  %p650_p7 = por %p649_p4, %p648_p9 }
  0x2c   : > { %p651_p10 = pnand %p650_p7, %p644_p11 }
  0x2e   : > { %654 = shalt.err (!%p651_p10)
}
  0x2f   : > { %s774_s29 = smov 32   ;;  %s775_s3 = smov 2  }
  0x30   : > { %552 = dma.hbm_to_vmem [thread:$0]  (!%p874_p0), %s868_s30, 128, %s870_s4, %s155_s6, %s774_s29, %s774_s29, %s775_s3  }
  0x31   : > { %p199_p12 = scmp.lt.s32.totalorder %s771_s14, 3  ;;  %s507_s7 = sshll.u32 %s861_s25, 1 }
  0x32   : > { %s508_s8 = sshll.u32 %s767_s13, 5  ;;  %p1085_p9 = scmp.ge.s32.totalorder %s771_s14, 1 }
  0x33   : > { %s919_s19 = scalar_lea.hbm %s1076_s1, %s508_s8  ;;  %s183_s20 = scalar_lea.vmem [#allocation5], %s507_s7 }
  0x34   : > { %p912_p11 = pnand %p1085_p9, %p199_p12  ;;  %s194_s26 = sshll.u32 %s183_s20, 4  ;;  %s195_s26 = int_to_ptr.vmem [resolvable:$true] %s194_s26 }
  0x35   : > { %s180_s30 = scalar_lea.sflag [#allocation6], %s861_s25  ;;  %s655_s4 = scalar_lea.hbm %s919_s19, 32 }
  0x36   : > { %s1086_s15 = scalar_select %p912_p11, 1, 0 }
  0x37   : > { %p656_p1 = scmp.ne.s32.totalorder %s919_s19, %s655_s4  ;;  %s660_s28 = scalar_lea.hbm %s1076_s1, 64 }
  0x38   : > { %p661_p2 = scmp.lt.u32.totalorder %s919_s19, %s1076_s1  ;;  %p662_p5 = scmp.lt.u32.totalorder %s660_s28, %s655_s4 }
  0x39   : > { %p658_p6 = pnand %p656_p1, %p627_p3  ;;  %p664_p7 = scmp.lt.u32.totalorder %s655_s4, %s919_s19 }
  0x3a   : > { %p663_p4 = por %p662_p5, %p661_p2 }
  0x3b   : > { %p659_p13 = pneg %p658_p6 }
  0x3c   : > { %p665_p10 = por %p664_p7, %p663_p4 }
  0x3e   : > { %p666_p12 = pnand %p665_p10, %p659_p13 }
  0x40   : > { %669 = shalt.err (!%p666_p12)
}
  0x41   : > { %s670_s25 = scalar_lea.vmem %s195_s26, 32  ;;  %s776_s7 = smov [#allocation5]  }
  0x42   : > { %p671_p9 = scmp.ne.s32.totalorder %s195_s26, %s670_s25  ;;  %s675_s8 = sshll.u32 %s776_s7, 4  ;;  %s676_s8 = int_to_ptr.vmem [resolvable:$false] %s675_s8 }
  0x43   : > { %s677_s16 = scalar_lea.vmem %s676_s8, 64  ;;  %p678_p8 = scmp.lt.s32.totalorder %s195_s26, %s676_s8 }
  0x44   : > { %p673_p1 = pnand %p671_p9, %p627_p3  ;;  %p679_p11 = scmp.lt.s32.totalorder %s677_s16, %s670_s25 }
  0x46   : > { %p674_p6 = pneg %p673_p1  ;;  %p680_p2 = por %p679_p11, %p678_p8 }
  0x48   : > { %p681_p5 = pnand %p680_p2, %p674_p6 }
  0x4a   : > { %684 = shalt.err (!%p681_p5)
}
  0x4b   : > { %555 = dma.hbm_to_vmem [thread:$0]  (!%p874_p0), %s919_s19, 32, %s195_s26, %s180_s30  }
  0x4c   : > { %p1087_p13 = scmp.ne.s32.totalorder %s1086_s15, 0 }
  0x4d   : > { %s944_s18 = sand.u32 (!%p1087_p13), 1, %s755_s10   ;;  %p1088_p3 = scmp.ne.s32.totalorder (!%p1087_p13), %s1081_s21, 0 }
  0x4e   : > { %203 = sbr.rel (%p1087_p13) target bundleno = 158 (0x9e), region = 28  ;;  %s510_s20 = sshll.u32 (!%p1087_p13), %s944_s18, 3 }
  0x4f   : > { %s206_s4 = scalar_lea.sflag (!%p1087_p13), [#allocation3], %s944_s18  ;;  %s209_s6 = scalar_lea.vmem (!%p1087_p13), [#allocation2], %s510_s20 }
  0x55   : > { %738 = dma.done.wait (%p1088_p3), %s206_s4, 128  }
  0x56   : > { %740 = vsyncadd (%p1088_p3), %s206_s4, 4294967168  ;;  %s511_s5 = sshll.u32 %s944_s18, 1  ;;  %s215_s15 = scalar_lea.sflag [#allocation6], %s944_s18 }
  0x57   : > { %s218_s19 = scalar_lea.vmem [#allocation5], %s511_s5 }
  0x58   : > { %742 = dma.done.wait (%p1088_p3), %s215_s15, 32  }
  0x59   : > { %744 = vsyncadd (%p1088_p3), %s215_s15, 4294967264  ;;  %s541_s26 = smul.u32 24, %s944_s18  ;;  %v777_v0 = vmov 0.0   ;;  %v973_v1 = vld [vmem:[%s218_s19] sm:$0x3]  ;;  %s372_s3 = scalar_lea.sflag [#allocation4], %s944_s18 }
  0x5a   : > { %v267_v2 = vld [vmem:[%s209_s6] sm:$0x3]  ;;  %v512_v3 = vld [vmem:[%s209_s6 + $0x2] sm:$0x3]  ;;  %v513_v4 = vld [vmem:[%s209_s6 + $0x4] sm:$0x3] }
  0x5b   : > { %s959_s30 = scalar_lea.vmem [#allocation7], %s541_s26  ;;  %v274_v5 = vmax.f32 %v267_v2, %v512_v3  ;;  %vm297_vm0 = vcmp.eq.s32.totalorder %v973_v1, 0  ;;  %vm304_vm1 = vcmp.eq.s32.totalorder %v973_v1, 1  ;;  %v514_v6 = vld [vmem:[%s209_s6 + $0x6] sm:$0x3]  ;;  %vm311_vm2 = vcmp.eq.s32.totalorder %v973_v1, 2 }
  0x5c   : > { %254 = vst [vmem:[%s959_s30] sm:$0x3] %v777_v0  ;;  %255 = vst [vmem:[%s959_s30 + $0x2] sm:$0x3] %v777_v0  ;;  %v301_v7 = vsel %vm297_vm0, 1.0, %v777_v0  ;;  %v308_v8 = vsel %vm304_vm1, 1.0, %v777_v0  ;;  %vm318_vm3 = vcmp.eq.s32.totalorder %v973_v1, 3 }
  0x5d   : > { %256 = vst [vmem:[%s959_s30 + $0x4] sm:$0x3] %v777_v0  ;;  %257 = vst [vmem:[%s959_s30 + $0x6] sm:$0x3] %v777_v0  ;;  %v275_v9 = vmax.f32 %v274_v5, %v513_v4  ;;  %v315_v15 = vsel %vm311_vm2, 1.0, %v777_v0  ;;  %v322_v16 = vsel %vm318_vm3, 1.0, %v777_v0 }
  0x5e   : > { %258 = vst [vmem:[%s959_s30 + $0x8] sm:$0x3] %v777_v0  ;;  %259 = vst [vmem:[%s959_s30 + $0xa] sm:$0x3] %v777_v0  ;;  %s542_s21 = smul.u32 384, %s763_s12  ;;  %s387_s27 = sshll.u32 %s959_s30, 4  ;;  %s1023_s27 = int_to_ptr.vmem [resolvable:$true] %s387_s27 }
  0x5f   : > { %260 = vst [vmem:[%s959_s30 + $0xc] sm:$0x3] %v777_v0  ;;  %261 = vst [vmem:[%s959_s30 + $0xe] sm:$0x3] %v777_v0  ;;  %v276_v13 = vmax.f32 %v275_v9, %v514_v6  ;;  %s685_s25 = scalar_lea.vmem %s1023_s27, 384  ;;  %p1089_p0 = scmp.ne.s32.totalorder %s1082_s22, 0 }
  0x60   : > { %262 = vst [vmem:[%s959_s30 + $0x10] sm:$0x3] %v777_v0  ;;  %263 = vst [vmem:[%s959_s30 + $0x12] sm:$0x3] %v777_v0  ;;  %s1021_s29 = scalar_lea.hbm %s1077_s2, %s542_s21  ;;  %p686_p8 = scmp.ne.s32.totalorder %s1023_s27, %s685_s25 }
  0x61   : > { %264 = vst [vmem:[%s959_s30 + $0x14] sm:$0x3] %v777_v0  ;;  %265 = vst [vmem:[%s959_s30 + $0x16] sm:$0x3] %v777_v0  ;;  %v277_v18 = vsub.f32 %v267_v2, %v276_v13  ;;  %v280_v19 = vsub.f32 %v512_v3, %v276_v13  ;;  %v283_v20 = vsub.f32 %v513_v4, %v276_v13  ;;  %s778_s7 = smov [#allocation7]  }
  0x62   : > { %v286_v21 = vsub.f32 %v514_v6, %v276_v13  ;;  %p687_p11 = pnand %p686_p8, %p1089_p0  ;;  %s689_s8 = sshll.u32 %s778_s7, 4  ;;  %s690_s8 = int_to_ptr.vmem [resolvable:$false] %s689_s8 }
  0x63   : > { %v278_v25 = vmul.f32 1.442695, %v277_v18  ;;  %v281_v26 = vmul.f32 1.442695, %v280_v19  ;;  %v284_v27 = vmul.f32 1.442695, %v283_v20  ;;  %p692_p7 = scmp.lt.s32.totalorder %s1023_s27, %s690_s8 }
  0x64   : > { %v287_v28 = vmul.f32 1.442695, %v286_v21  ;;  %v324_v43 = vld [vmem:[%s959_s30] sm:$0x3]  ;;  %v519_v45 = vld [vmem:[%s959_s30 + $0x2] sm:$0x3]  ;;  %p688_p4 = pneg %p687_p11 }
  0x65   : > { %615 = vpow2.f32 %v278_v25  ;;  %v515_v40 = vld [vmem:[%s959_s30 + $0x8] sm:$0x3]  ;;  %v521_v41 = vld [vmem:[%s959_s30 + $0xa] sm:$0x3]  ;;  %v525_v49 = vld [vmem:[%s959_s30 + $0x4] sm:$0x3] }
  0x66   : > { %617 = vpow2.f32 %v281_v26  ;;  %v527_v47 = vld [vmem:[%s959_s30 + $0xc] sm:$0x3]  ;;  %v533_v50 = vld [vmem:[%s959_s30 + $0xe] sm:$0x3]  ;;  %v531_v55 = vld [vmem:[%s959_s30 + $0x6] sm:$0x3] }
  0x67   : > { %v517_v10 = vld [vmem:[%s959_s30 + $0x10] sm:$0x3]  ;;  %v523_v12 = vld [vmem:[%s959_s30 + $0x12] sm:$0x3]  ;;  %619 = vpow2.f32 %v284_v27  ;;  %s691_s16 = scalar_lea.vmem %s690_s8, 768 }
  0x68   : > { %v333_v11 = vadd.f32 %v517_v10, %v301_v7  ;;  %v345_v14 = vadd.f32 %v523_v12, %v308_v8  ;;  %v529_v17 = vld [vmem:[%s959_s30 + $0x14] sm:$0x3]  ;;  %v535_v22 = vld [vmem:[%s959_s30 + $0x16] sm:$0x3]  ;;  %621 = vpow2.f32 %v287_v28  ;;  %p693_p10 = scmp.lt.s32.totalorder %s691_s16, %s685_s25 }
  0x69   : > { %v357_v23 = vadd.f32 %v529_v17, %v315_v15  ;;  %v369_v24 = vadd.f32 %v535_v22, %v322_v16 }
  0x6a   : > { %518 = vst [vmem:[%s959_s30 + $0x10] sm:$0x3] %v333_v11  ;;  %524 = vst [vmem:[%s959_s30 + $0x12] sm:$0x3] %v345_v14  ;;  %p694_p12 = por %p693_p10, %p692_p7 }
  0x6b   : > { %530 = vst [vmem:[%s959_s30 + $0x14] sm:$0x3] %v357_v23  ;;  %536 = vst [vmem:[%s959_s30 + $0x16] sm:$0x3] %v369_v24 }
  0x6c   : > { %p695_p9 = pnand %p694_p12, %p688_p4 }
  0x6f   : > { %v616_v29 = vpop.eup %615 }
  0x70   : > { %v618_v30 = vpop.eup %617 }
  0x71   : > { %v620_v31 = vpop.eup %619  ;;  %v289_v32 = vadd.f32 %v618_v30, %v616_v29 }
  0x72   : > { %v622_v33 = vpop.eup %621 }
  0x73   : > { %v290_v34 = vadd.f32 %v620_v31, %v289_v32 }
  0x75   : > { %v291_v35 = vadd.f32 %v622_v33, %v290_v34 }
  0x77   : > { %623 = vrcp.f32 %v291_v35 }
  0x81   : > { %v624_v36 = vpop.eup %623 }
  0x82   : > { %v293_v37 = vmul.f32 %v624_v36, %v291_v35 }
  0x84   : > { %v294_v38 = vsub.f32 2.0, %v293_v37 }
  0x86   : > { %v295_v39 = vmul.f32 %v624_v36, %v294_v38 }
  0x88   : > { %v296_v42 = vmul.f32 %v616_v29, %v295_v39  ;;  %v303_v44 = vmul.f32 %v618_v30, %v295_v39  ;;  %v310_v46 = vmul.f32 %v620_v31, %v295_v39  ;;  %v317_v48 = vmul.f32 %v622_v33, %v295_v39 }
  0x8a   : > { %v298_v51 = vsel %vm297_vm0, %v296_v42, 0.0  ;;  %v329_v52 = vadd.f32 %v515_v40, %v296_v42  ;;  %v305_v53 = vsel %vm304_vm1, %v303_v44, 0.0  ;;  %v341_v54 = vadd.f32 %v521_v41, %v303_v44 }
  0x8b   : > { %v325_v56 = vadd.f32 %v324_v43, %v298_v51  ;;  %v337_v57 = vadd.f32 %v519_v45, %v305_v53  ;;  %v312_v58 = vsel %vm311_vm2, %v310_v46, 0.0  ;;  %v353_v59 = vadd.f32 %v527_v47, %v310_v46 }
  0x8c   : > { %516 = vst [vmem:[%s959_s30 + $0x8] sm:$0x3] %v329_v52  ;;  %522 = vst [vmem:[%s959_s30 + $0xa] sm:$0x3] %v341_v54  ;;  %v349_v60 = vadd.f32 %v525_v49, %v312_v58  ;;  %v319_v61 = vsel %vm318_vm3, %v317_v48, 0.0  ;;  %v365_v62 = vadd.f32 %v533_v50, %v317_v48 }
  0x8d   : > { %326 = vst [vmem:[%s959_s30] sm:$0x3] %v325_v56  ;;  %520 = vst [vmem:[%s959_s30 + $0x2] sm:$0x3] %v337_v57  ;;  %v361_v63 = vadd.f32 %v531_v55, %v319_v61 }
  0x8e   : > { %528 = vst [vmem:[%s959_s30 + $0xc] sm:$0x3] %v353_v59  ;;  %526 = vst [vmem:[%s959_s30 + $0x4] sm:$0x3] %v349_v60 }
  0x8f   : > { %534 = vst [vmem:[%s959_s30 + $0xe] sm:$0x3] %v365_v62  ;;  %532 = vst [vmem:[%s959_s30 + $0x6] sm:$0x3] %v361_v63 }
  0x90   : > { %698 = shalt.err (!%p695_p9)
}
  0x91   : > { %s699_s20 = scalar_lea.hbm %s1021_s29, 384  ;;  %s703_s5 = scalar_lea.hbm %s1077_s2, 768 }
  0x92   : > { %p700_p1 = scmp.ne.s32.totalorder %s1021_s29, %s699_s20  ;;  %p704_p5 = scmp.lt.u32.totalorder %s1021_s29, %s1077_s2 }
  0x93   : > { %p705_p13 = scmp.lt.u32.totalorder %s703_s5, %s699_s20  ;;  %p707_p8 = scmp.lt.u32.totalorder %s699_s20, %s1021_s29 }
  0x94   : > { %p701_p6 = pnand %p700_p1, %p1089_p0 }
  0x95   : > { %p706_p3 = por %p705_p13, %p704_p5 }
  0x96   : > { %p702_p2 = pneg %p701_p6 }
  0x97   : > { %p708_p11 = por %p707_p8, %p706_p3 }
  0x99   : > { %p709_p4 = pnand %p708_p11, %p702_p2 }
  0x9b   : > { %712 = shalt.err (!%p709_p4)
}
  0x9c   : > { %s779_s26 = smov 32   ;;  %s780_s30 = smov 2  }
  0x9d   : > { %547 = dma.vmem_to_hbm [thread:$0]  (%p1089_p0), %s1023_s27, 384, %s1021_s29, %s372_s3, %s779_s26, %s779_s26, %s780_s30  }
  0x9e PF: > { %s402_s21 = sand.u32 1, %s751_s9   ;;  %p1090_p7 = scmp.ne.s32.totalorder %s1083_s24, 0 }
  0x9f   : > { %p1091_p10 = scmp.ge.s32.totalorder %s771_s14, 2  ;;  %s403_s12 = scalar_lea.sflag [#allocation4], %s402_s21 }
  0xa1   : > { %p557_p12 = pnand %p1091_p10, %p1090_p7 }
  0xa3   : > { %746 = dma.done.wait (!%p557_p12), %s403_s12, 384  }
  0xa4   : > { %748 = vsyncadd (!%p557_p12), %s403_s12, 4294966912  ;;  %s21_s14 = sadd.s32 1, %s771_s14   ;;  %s1092_s9 = smov %s755_s10 }
  0xa5   : > { %p18_p9 = scmp.ge.s32.totalorder %s21_s14, 4   ;;  %s1093_s10 = smov %s759_s11 }
  0xa6   : > { %s1094_s11 = smov %s852_s23  ;;  %s1095_s12 = smov %s767_s13 }
  0xa7   : > { %s1096_s13 = smov %s1098_s17  ;;  %20 = sbr.rel (!%p18_p9) target bundleno = 8 (0x8), region = 104 }
  0xae   :  { %408 = vsyncpa [#allocation3], 1 }
  0xaf   :  { %410 = vsyncpa [#allocation3 + $0x1], 1 }
  0xb0   :  { %411 = vsyncpa [#allocation6], 1 }
  0xb1   :  { %413 = vsyncpa [#allocation6 + $0x1], 1 }
  0xb2   :  { %414 = vsyncpa [#allocation4], 1 }
  0xb3   :  { %416 = vsyncpa [#allocation4 + $0x1], 1 }

</bundles_post_ra>
